<compile_context>
chip_gen: v7x
topology: tpu7x:2x2x1
jax: 0.10.0
libtpu: 0.0.40
codegen_flags: <defaults>
</compile_context>

<pallas_src>
import math

import jax
import jax.numpy as jnp
from jax.experimental import pallas as pl
from jax.experimental.pallas import tpu as pltpu

_LANE = 128
_SUBLANE = 8


def _round_up(x, m):
    return (x + m - 1) // m * m


def _choose_tile(dim, preferred, align):
    """Pick a tile for `dim`.

    Returns (tile, padded_dim).  If dim <= preferred we use a single full-array
    block (always legal regardless of (8,128) alignment).  Otherwise we pick the
    largest `align`-multiple <= preferred that divides dim; if none exists we
    fall back to padding dim up to a multiple of the preferred tile.
    """
    if dim <= preferred:
        return dim, dim
    t = (preferred // align) * align
    while t >= align:
        if dim % t == 0:
            return t, dim
        t -= align
    t = (preferred // align) * align
    return t, _round_up(dim, t)


# ---------------------------------------------------------------------------
# Pallas kernel: tiled fused linear  o = x @ W + b   (W already [K, N] bf16)
#   x_ref: [tm, tk] bf16
#   w_ref: [tk, tn] bf16
#   b_ref: [1,  tn] f32   (K-invariant block -> not re-DMA'd inside K loop)
#   o_ref: [tm, tn] f32   (K-invariant block -> VMEM-resident accumulator)
# ---------------------------------------------------------------------------
def _linear_kernel(x_ref, w_ref, b_ref, o_ref):
    k = pl.program_id(2)

    @pl.when(k == 0)
    def _():
        # Initialize the resident f32 output tile with the broadcast bias:
        # no zeros-init, no scratch accumulator, no epilogue add+copy.
        o_ref[...] = jnp.broadcast_to(b_ref[...], o_ref.shape)

    # bf16 x bf16 -> f32 accumulate on the MXU, directly into the output tile.
    o_ref[...] += jnp.dot(
        x_ref[...], w_ref[...], preferred_element_type=jnp.float32
    )


def pallas_linear(x, w_kn_bf16, b_row_f32, *, out_features=None,
                  tm=256, tn=512, tk=512):
    """y = x @ W + b.

    x:           [B, K]   float (cast to bf16 once here, before any DMA)
    w_kn_bf16:   [Kp, Np] bf16, pre-transposed & lane-padded at module init
    b_row_f32:   [1, Np]  f32,  lane-padded at module init
    Returns [B, out_features] f32.
    """
    B, K = x.shape
    Kp, Np = w_kn_bf16.shape
    assert K <= Kp and b_row_f32.shape == (1, Np)
    N = Np if out_features is None else out_features

    # Tile selection (full-array blocks for small dims, aligned divisors else).
    tm, Bp = _choose_tile(B, tm, _SUBLANE)
    tn, _ = _choose_tile(Np, tn, _LANE)   # Np is 128-padded at init -> exact
    tk, _ = _choose_tile(Kp, tk, _LANE)   # Kp is 128-padded at init -> exact

    # One-time bf16 cast of the activations (halves their HBM traffic vs f32
    # and removes the per-step cast from the kernel body).  Pad only if the
    # runtime shape is ragged; zero-padding on K contributes nothing to the dot.
    x_bf16 = x.astype(jnp.bfloat16)
    if (Bp, Kp) != (B, K):
        x_bf16 = jnp.pad(x_bf16, ((0, Bp - B), (0, Kp - K)))

    grid = (Bp // tm, Np // tn, Kp // tk)

    flops = 2 * Bp * Kp * Np
    bytes_accessed = (
        (Np // tn) * Bp * Kp * 2      # x streamed once per N-tile column
        + (Bp // tm) * Kp * Np * 2    # W streamed once per M-tile row
        + Bp * Np * 4                 # output written once
        + Np * 4                      # bias
    )

    out = pl.pallas_call(
        _linear_kernel,
        out_shape=jax.ShapeDtypeStruct((Bp, Np), jnp.float32),
        grid_spec=pltpu.PrefetchScalarGridSpec(
            num_scalar_prefetch=0,
            grid=grid,
            in_specs=[
                pl.BlockSpec((tm, tk), lambda i, j, k: (i, k)),   # x  [B, K]
                pl.BlockSpec((tk, tn), lambda i, j, k: (k, j)),   # W  [K, N]
                pl.BlockSpec((1, tn), lambda i, j, k: (0, j)),    # bias (K-inv)
            ],
            out_specs=pl.BlockSpec((tm, tn), lambda i, j, k: (i, j)),
        ),
        compiler_params=pltpu.CompilerParams(
            # M/N tiles are independent -> shard across v7x's 2 TensorCores;
            # K is the reduction axis (output block resident across it).
            dimension_semantics=("parallel", "parallel", "arbitrary"),
        ),
        cost_estimate=pl.CostEstimate(
            flops=int(flops), transcendentals=0,
            bytes_accessed=int(bytes_accessed),
        ),
    )(x_bf16, w_kn_bf16, b_row_f32)

    if (Bp, Np) != (B, N):
        out = out[:B, :N]
    return out


# ---------------------------------------------------------------------------
# Synthetic inner module (stand-in for whatever LocalDDP wraps in pretrain):
# a single nn.Linear(in_features, out_features) with PyTorch default init.
# ---------------------------------------------------------------------------
class SyntheticLinearModule:
    def __init__(self, in_features, out_features, key):
        kw, kb = jax.random.split(key)
        bound = 1.0 / math.sqrt(in_features)
        # PyTorch weight layout [out_features, in_features] kept for reference.
        self.weight = jax.random.uniform(
            kw, (out_features, in_features), jnp.float32, -bound, bound
        )
        self.bias = jax.random.uniform(
            kb, (out_features,), jnp.float32, -bound, bound
        )
        self.in_features = in_features
        self.out_features = out_features

        # One-time init cost (never per call): transpose to [K, N], cast to
        # bf16, and zero-pad K/N to lane multiples so the kernel always sees an
        # MXU-natural, lane-aligned weight and never pads/transposes W again.
        Kp = _round_up(in_features, _LANE)
        Np = _round_up(out_features, _LANE)
        w_kn = self.weight.T.astype(jnp.bfloat16)            # [K, N]
        if (Kp, Np) != (in_features, out_features):
            w_kn = jnp.pad(
                w_kn, ((0, Kp - in_features), (0, Np - out_features))
            )
        self.weight_kn_bf16 = w_kn
        b = self.bias
        if Np != out_features:
            b = jnp.pad(b, (0, Np - out_features))
        self.bias_row = b.reshape(1, Np).astype(jnp.float32)

    def __call__(self, x):
        return pallas_linear(
            x, self.weight_kn_bf16, self.bias_row,
            out_features=self.out_features,
        )


# ---------------------------------------------------------------------------
# LocalDDP equivalent: pure delegation (exact forward semantics of the PyTorch
# module).
# TODO(synk): DistributedDataParallel-style gradient bucketing/all-reduce is a
# backward-pass concern with no forward-pass equivalent to translate; forward
# is identity delegation only.
# ---------------------------------------------------------------------------
class LocalDDP:
    def __init__(self, module):
        self.module = module

    def __call__(self, *args, **kwargs):
        # forward(*args, **kwargs) -> self.module(*args, **kwargs)
        return self.module(*args, **kwargs)


if __name__ == "__main__":
    key = jax.random.PRNGKey(0)
    k_param, k_x = jax.random.split(key)

    # Small, MXU-aligned problem: runs as a single full-array block
    # (one grid step, <1 MiB VMEM) per the tile-selection logic above.
    batch, in_features, out_features = 256, 256, 256
    inner = SyntheticLinearModule(in_features, out_features, k_param)
    model = LocalDDP(inner)

    x = jax.random.normal(k_x, (batch, in_features), dtype=jnp.float32)

    y = jax.block_until_ready(model(x))
    assert y.shape == (batch, out_features)

    # Reference 1: same operand precision (bf16 operands, f32 accumulate).
    y_ref_bf16 = (
        jnp.dot(
            x.astype(jnp.bfloat16),
            inner.weight.T.astype(jnp.bfloat16),
            preferred_element_type=jnp.float32,
        )
        + inner.bias
    )
    assert jnp.allclose(y, y_ref_bf16, atol=1e-3, rtol=1e-3), float(
        jnp.max(jnp.abs(y - y_ref_bf16))
    )

    # Reference 2 (sanity): exact f32 PyTorch-Linear semantics, looser tol
    # because the kernel rounds operands to bf16 before the MXU.
    y_ref_f32 = x @ inner.weight.T + inner.bias
    assert jnp.allclose(y, y_ref_f32, atol=1e-1, rtol=1e-1)

    print("KERNEL_OK")
</pallas_src>

<mosaic_0001>
module attributes {stable_mosaic.version = 11 : i64} {
  func.func @_linear_kernel(%arg0: i32, %arg1: i32, %arg2: i32, %arg3: memref<256x256xbf16, #tpu.memory_space<vmem>>, %arg4: memref<256x256xbf16, #tpu.memory_space<vmem>>, %arg5: memref<1x256xf32, #tpu.memory_space<vmem>>, %arg6: memref<256x256xf32, #tpu.memory_space<vmem>>) attributes {dimension_semantics = [#tpu.dimension_semantics<parallel>, #tpu.dimension_semantics<parallel>, #tpu.dimension_semantics<arbitrary>], iteration_bounds = array<i64: 1, 1, 1>, scalar_prefetch = 0 : i64, scratch_operands = 0 : i64, tpu.core_type = #tpu.core_type<tc>, window_params = [{transform_indices = @transform_0, window_bounds = array<i64: 256, 256>}, {transform_indices = @transform_1, window_bounds = array<i64: 256, 256>}, {transform_indices = @transform_2, window_bounds = array<i64: 1, 256>}, {transform_indices = @transform_3, window_bounds = array<i64: 256, 256>}]} {
    %c0_i32 = arith.constant 0 : i32
    %0 = arith.cmpi eq, %arg2, %c0_i32 : i32
    %1 = arith.extui %0 : i1 to i32
    %c0_i32_0 = arith.constant 0 : i32
    %2 = arith.cmpi ne, %1, %c0_i32_0 : i32
    scf.if %2 {
      %c0_8 = arith.constant 0 : index
      %c0_9 = arith.constant 0 : index
      %9 = vector.load %arg5[%c0_8, %c0_9] : memref<1x256xf32, #tpu.memory_space<vmem>>, vector<1x256xf32>
      %10 = vector.shape_cast %9 : vector<1x256xf32> to vector<1x256xf32>
      %11 = vector.broadcast %10 : vector<1x256xf32> to vector<256x256xf32>
      %c0_10 = arith.constant 0 : index
      %c0_11 = arith.constant 0 : index
      %12 = vector.load %arg6[%c0_10, %c0_11] : memref<256x256xf32, #tpu.memory_space<vmem>>, vector<256x256xf32>
      tpu.vector_store %arg6[%c0_10, %c0_11], %11 {strides = array<i32>} : memref<256x256xf32, #tpu.memory_space<vmem>>, vector<256x256xf32>,
    } else {
    }
    %c0 = arith.constant 0 : index
    %c0_1 = arith.constant 0 : index
    %3 = vector.load %arg6[%c0, %c0_1] : memref<256x256xf32, #tpu.memory_space<vmem>>, vector<256x256xf32>
    %c0_2 = arith.constant 0 : index
    %c0_3 = arith.constant 0 : index
    %4 = vector.load %arg3[%c0_2, %c0_3] : memref<256x256xbf16, #tpu.memory_space<vmem>>, vector<256x256xbf16>
    %c0_4 = arith.constant 0 : index
    %c0_5 = arith.constant 0 : index
    %5 = vector.load %arg4[%c0_4, %c0_5] : memref<256x256xbf16, #tpu.memory_space<vmem>>, vector<256x256xbf16>
    %cst = arith.constant dense<0.000000e+00> : vector<256x256xf32>
    %6 = tpu.matmul %4, %5, %cst {dimension_numbers = #tpu.dot_dimension_numbers<[1], [0], [0], [1], [0, 0, 1, 1], [], []>} : vector<256x256xbf16>, vector<256x256xbf16>, vector<256x256xf32> -> vector<256x256xf32>
    %7 = arith.addf %3, %6 : vector<256x256xf32>
    %c0_6 = arith.constant 0 : index
    %c0_7 = arith.constant 0 : index
    %8 = vector.load %arg6[%c0_6, %c0_7] : memref<256x256xf32, #tpu.memory_space<vmem>>, vector<256x256xf32>
    tpu.vector_store %arg6[%c0_6, %c0_7], %7 {strides = array<i32>} : memref<256x256xf32, #tpu.memory_space<vmem>>, vector<256x256xf32>,
    return
  }
  func.func @transform_0(%arg0: i32, %arg1: i32, %arg2: i32) -> (i32, i32) {
    %c0_i32 = arith.constant 0 : i32
    return %arg0, %arg2 : i32, i32
  }
  func.func @transform_1(%arg0: i32, %arg1: i32, %arg2: i32) -> (i32, i32) {
    %c0_i32 = arith.constant 0 : i32
    return %arg2, %arg1 : i32, i32
  }
  func.func @transform_2(%arg0: i32, %arg1: i32, %arg2: i32) -> (i32, i32) {
    %c0_i32 = arith.constant 0 : i32
    %c0_i32_0 = arith.constant 0 : i32
    return %c0_i32, %arg1 : i32, i32
  }
  func.func @transform_3(%arg0: i32, %arg1: i32, %arg2: i32) -> (i32, i32) {
    %c0_i32 = arith.constant 0 : i32
    return %arg0, %arg1 : i32, i32
  }
}

</mosaic_0001>

<bundles_post_ra>
// kernel: tpu_custom_call.1
= control target key start
LH: loop header
LB: loop body
LE: loop exit
PB: predicated region body
PF: predicated region fallthrough
CT: control target
= control target key end

     0   :  { %8 = vsyncpa [#allocation3], 0  ;;  %s1315_s0 = inlined_call_operand.hbm [shape: bf16[256,256], index: 0, kind: input, shape index: {}]   ;;  %s1316_s1 = inlined_call_operand.hbm [shape: bf16[256,256], index: 1, kind: input, shape index: {}]   ;;  %s1317_s2 = inlined_call_operand.vmem [shape: f32[1,256], index: 2, kind: input, shape index: {}]   ;;  %s1318_s3 = inlined_call_operand.hbm [shape: f32[256,256], index: 3, kind: output, shape index: {}]  }
   0x1   :  { %9 = vsyncpa [#allocation6], 0 }
   0x2   :  { %10 = vsyncpa [#allocation4], 0  ;;  %s1181_s12 = smov [#allocation2]   ;;  %s1109_s16 = scalar_lea.hbm %s1315_s0, 4096 }
   0x3   :  { %s16_s13 = sshll.u32 %s1181_s12, 4  ;;  %p1110_p0 = scmp.ne.s32.totalorder %s1315_s0, %s1109_s16  ;;  %s17_s13 = int_to_ptr.vmem [resolvable:$true] %s16_s13 }
   0x4   :  { %p1113_p1 = scmp.lt.u32.totalorder %s1109_s16, %s1315_s0 }
   0x6   :  { %p1115_p2 = pnand %p1113_p1, %p1110_p0 }
   0x8   :  { %1118 = shalt.err (!%p1115_p2)
}
   0x9   :  { %s1119_s21 = scalar_lea.vmem %s17_s13, 4096  ;;  %p1124_p4 = scmp.lt.s32.totalorder %s17_s13, %s17_s13 }
   0xa   :  { %p1120_p3 = scmp.ne.s32.totalorder %s17_s13, %s1119_s21  ;;  %p1125_p5 = scmp.lt.s32.totalorder %s1119_s21, %s1119_s21 }
   0xc   :  { %p1126_p6 = por %p1125_p5, %p1124_p4 }
   0xe   :  { %p1127_p7 = pnand %p1126_p6, %p1120_p3 }
  0x10   :  { %1130 = shalt.err (!%p1127_p7)
}
  0x11   :  { %s1182_s22 = smov 128   ;;  %s1183_s23 = smov 8  }
  0x12   :  { %22 = dma.hbm_to_vmem [thread:$0]  %s1315_s0, 4096, %s17_s13, [#allocation3], %s1182_s22, %s1182_s22, %s1183_s23  }
  0x13   :  { %s1184_s26 = smov [#allocation5]   ;;  %s1131_s30 = scalar_lea.hbm %s1316_s1, 4096 }
  0x14   :  { %s28_s27 = sshll.u32 %s1184_s26, 4  ;;  %p1132_p8 = scmp.ne.s32.totalorder %s1316_s1, %s1131_s30  ;;  %s29_s27 = int_to_ptr.vmem [resolvable:$true] %s28_s27 }
  0x15   :  { %p1135_p9 = scmp.lt.u32.totalorder %s1131_s30, %s1316_s1 }
  0x17   :  { %p1137_p10 = pnand %p1135_p9, %p1132_p8 }
  0x19   :  { %1140 = shalt.err (!%p1137_p10)
}
  0x1a   :  { %s1141_s8 = scalar_lea.vmem %s29_s27, 4096  ;;  %p1146_p12 = scmp.lt.s32.totalorder %s29_s27, %s29_s27 }
  0x1b   :  { %p1142_p11 = scmp.ne.s32.totalorder %s29_s27, %s1141_s8  ;;  %p1147_p13 = scmp.lt.s32.totalorder %s1141_s8, %s1141_s8 }
  0x1d   :  { %p1148_p0 = por %p1147_p13, %p1146_p12 }
  0x1f   :  { %p1149_p1 = pnand %p1148_p0, %p1142_p11 }
  0x21   :  { %1152 = shalt.err (!%p1149_p1)
}
  0x22   :  { %34 = dma.hbm_to_vmem [thread:$0]  %s1316_s1, 4096, %s29_s27, [#allocation6], %s1182_s22, %s1182_s22, %s1183_s23  }
  0x23   :  { %1175 = dma.done.wait [#allocation3], 4096  }
  0x24   :  { %1176 = vsyncadd [#allocation3], 4294963200 }
  0x25   :  { %1177 = dma.done.wait [#allocation6], 4096  }
  0x26   :  { %1178 = vsyncadd [#allocation6], 4294963200  ;;  %v1013_v0 = vld [vmem:[#allocation5 + $0x4] ss:$8 sps:$4 sm:$0xff]   ;;  %v1015_v1 = vld [vmem:[#allocation5] ss:$8 sps:$4 sm:$0xff]  }
  0x27   :  { %571 = vmatprep.subr.bf16.mxu0 %v1013_v0  ;;  %974 = vmatprep.subr.bf16.mxu1 %v1013_v0  ;;  %v1016_v2 = vld [vmem:[#allocation5 + $0x14] ss:$8 sps:$4 sm:$0xff]   ;;  %v1018_v3 = vld [vmem:[#allocation5 + $0x10] ss:$8 sps:$4 sm:$0xff]   ;;  %v1019_v4 = vld [vmem:[#allocation5 + $0x24] ss:$8 sps:$4 sm:$0xff]   ;;  %v49_v0 = vlaneseq }
  0x28   :  { %572 = vmatpush1.bf16.msra.mxu0 %v1015_v1  ;;  %990 = vmatpush1.bf16.msra.mxu1 %v1015_v1  ;;  %v1021_v5 = vld [vmem:[#allocation5 + $0x20] ss:$8 sps:$4 sm:$0xff]   ;;  %v1022_v6 = vld [vmem:[#allocation5 + $0x34] ss:$8 sps:$4 sm:$0xff]   ;;  %v1024_v7 = vld [vmem:[#allocation5 + $0x30] ss:$8 sps:$4 sm:$0xff]  }
  0x29   :  { %573 = vmatprep.subr.bf16.mxu0 %v1016_v2  ;;  %975 = vmatprep.subr.bf16.mxu1 %v1016_v2  ;;  %v1025_v8 = vld [vmem:[#allocation5 + $0x44] ss:$8 sps:$4 sm:$0xff]   ;;  %v1027_v9 = vld [vmem:[#allocation5 + $0x40] ss:$8 sps:$4 sm:$0xff]   ;;  %v1028_v10 = vld [vmem:[#allocation5 + $0x54] ss:$8 sps:$4 sm:$0xff]  }
  0x2a   :  { %v1030_v11 = vld [vmem:[#allocation5 + $0x50] ss:$8 sps:$4 sm:$0xff]   ;;  %v1031_v12 = vld [vmem:[#allocation5 + $0x64] ss:$8 sps:$4 sm:$0xff]   ;;  %v1033_v14 = vld [vmem:[#allocation5 + $0x60] ss:$8 sps:$4 sm:$0xff]  }
  0x2b   :  { %v1063_v13 = vld [vmem:[#allocation2 + $0x4] ss:$8 sps:$4 sm:$0xff]   ;;  %v1034_v16 = vld [vmem:[#allocation5 + $0x74] ss:$8 sps:$4 sm:$0xff]   ;;  %v1036_v17 = vld [vmem:[#allocation5 + $0x70] ss:$8 sps:$4 sm:$0xff]  }
  0x2c   :  { %574 = vmatpush1.bf16.msra.mxu0 %v1018_v3  ;;  %991 = vmatpush1.bf16.msra.mxu1 %v1018_v3  ;;  %v1066_v15 = vld [vmem:[#allocation2 + $0x84] ss:$8 sps:$4 sm:$0xff]   ;;  %v1039_v19 = vld [vmem:[#allocation5 + $0x80] ss:$8 sps:$4 sm:$0xff]   ;;  %v1040_v20 = vld [vmem:[#allocation5 + $0x94] ss:$8 sps:$4 sm:$0xff]  }
  0x2d   :  { %575 = vmatprep.subr.bf16.mxu0 %v1019_v4  ;;  %976 = vmatprep.subr.bf16.mxu1 %v1019_v4  ;;  %v1037_v18 = vld [vmem:[#allocation5 + $0x84] ss:$8 sps:$4 sm:$0xff]   ;;  %v1042_v21 = vld [vmem:[#allocation5 + $0x90] ss:$8 sps:$4 sm:$0xff]   ;;  %v1045_v23 = vld [vmem:[#allocation5 + $0xa0] ss:$8 sps:$4 sm:$0xff]  }
  0x2e   :  { %603 = vmatprep.mubr.bf16.mxu0 %v1063_v13  ;;  %683 = vmatprep.mubr.bf16.mxu1 %v1066_v15  ;;  %v1043_v22 = vld [vmem:[#allocation5 + $0xa4] ss:$8 sps:$4 sm:$0xff]   ;;  %v1046_v24 = vld [vmem:[#allocation5 + $0xb4] ss:$8 sps:$4 sm:$0xff]   ;;  %v1048_v25 = vld [vmem:[#allocation5 + $0xb0] ss:$8 sps:$4 sm:$0xff]  }
  0x2f   :  { %v1049_v26 = vld [vmem:[#allocation5 + $0xc4] ss:$8 sps:$4 sm:$0xff]   ;;  %v1051_v27 = vld [vmem:[#allocation5 + $0xc0] ss:$8 sps:$4 sm:$0xff]   ;;  %v1052_v28 = vld [vmem:[#allocation5 + $0xd4] ss:$8 sps:$4 sm:$0xff]  }
  0x30   :  { %576 = vmatpush1.bf16.msra.mxu0 %v1021_v5  ;;  %992 = vmatpush1.bf16.msra.mxu1 %v1021_v5  ;;  %v1054_v29 = vld [vmem:[#allocation5 + $0xd0] ss:$8 sps:$4 sm:$0xff]   ;;  %v1055_v30 = vld [vmem:[#allocation5 + $0xe4] ss:$8 sps:$4 sm:$0xff]   ;;  %v1057_v31 = vld [vmem:[#allocation5 + $0xe0] ss:$8 sps:$4 sm:$0xff]  }
  0x31   :  { %577 = vmatprep.subr.bf16.mxu0 %v1022_v6  ;;  %977 = vmatprep.subr.bf16.mxu1 %v1022_v6  ;;  %v1058_v32 = vld [vmem:[#allocation5 + $0xf4] ss:$8 sps:$4 sm:$0xff]   ;;  %v1060_v33 = vld [vmem:[#allocation5 + $0xf0] ss:$8 sps:$4 sm:$0xff]   ;;  %v1061_v34 = vld [vmem:[#allocation2] ss:$8 sps:$4 sm:$0xff]  }
  0x32   :  { %v1064_v35 = vld [vmem:[#allocation2 + $0x80] ss:$8 sps:$4 sm:$0xff]   ;;  %v1067_v36 = vld [vmem:[#allocation2 + $0x14] ss:$8 sps:$4 sm:$0xff]   ;;  %v1071_v38 = vld [vmem:[#allocation2 + $0x10] ss:$8 sps:$4 sm:$0xff]  }
  0x33   :  { %v1069_v37 = vld [vmem:[#allocation2 + $0x94] ss:$8 sps:$4 sm:$0xff]   ;;  %v1072_v39 = vld [vmem:[#allocation2 + $0x90] ss:$8 sps:$4 sm:$0xff]   ;;  %v1073_v40 = vld [vmem:[#allocation2 + $0x24] ss:$8 sps:$4 sm:$0xff]  }
  0x34   :  { %578 = vmatpush1.bf16.msra.mxu0 %v1024_v7  ;;  %993 = vmatpush1.bf16.msra.mxu1 %v1024_v7  ;;  %v1075_v41 = vld [vmem:[#allocation2 + $0xa4] ss:$8 sps:$4 sm:$0xff]   ;;  %v1077_v42 = vld [vmem:[#allocation2 + $0x20] ss:$8 sps:$4 sm:$0xff]   ;;  %v1079_v44 = vld [vmem:[#allocation2 + $0x34] ss:$8 sps:$4 sm:$0xff]  }
  0x35   :  { %579 = vmatprep.subr.bf16.mxu0 %v1025_v8  ;;  %978 = vmatprep.subr.bf16.mxu1 %v1025_v8  ;;  %v1078_v43 = vld [vmem:[#allocation2 + $0xa0] ss:$8 sps:$4 sm:$0xff]   ;;  %v1081_v45 = vld [vmem:[#allocation2 + $0xb4] ss:$8 sps:$4 sm:$0xff]   ;;  %v1083_v46 = vld [vmem:[#allocation2 + $0x30] ss:$8 sps:$4 sm:$0xff]  }
  0x36   :  { %v1084_v47 = vld [vmem:[#allocation2 + $0xb0] ss:$8 sps:$4 sm:$0xff]   ;;  %v1085_v48 = vld [vmem:[#allocation2 + $0x44] ss:$8 sps:$4 sm:$0xff]   ;;  %v1089_v50 = vld [vmem:[#allocation2 + $0x40] ss:$8 sps:$4 sm:$0xff]  }
  0x37   :  { %v1087_v49 = vld [vmem:[#allocation2 + $0xc4] ss:$8 sps:$4 sm:$0xff]   ;;  %v1090_v51 = vld [vmem:[#allocation2 + $0xc0] ss:$8 sps:$4 sm:$0xff]   ;;  %v1091_v52 = vld [vmem:[#allocation2 + $0x54] ss:$8 sps:$4 sm:$0xff]  }
  0x38   :  { %580 = vmatpush1.bf16.msra.mxu0 %v1027_v9  ;;  %994 = vmatpush1.bf16.msra.mxu1 %v1027_v9  ;;  %v1093_v53 = vld [vmem:[#allocation2 + $0xd4] ss:$8 sps:$4 sm:$0xff]   ;;  %v1095_v54 = vld [vmem:[#allocation2 + $0x50] ss:$8 sps:$4 sm:$0xff]   ;;  %v1097_v56 = vld [vmem:[#allocation2 + $0x64] ss:$8 sps:$4 sm:$0xff]  }
  0x39   :  { %581 = vmatprep.subr.bf16.mxu0 %v1028_v10  ;;  %979 = vmatprep.subr.bf16.mxu1 %v1028_v10  ;;  %v1096_v55 = vld [vmem:[#allocation2 + $0xd0] ss:$8 sps:$4 sm:$0xff]   ;;  %v1099_v57 = vld [vmem:[#allocation2 + $0xe4] ss:$8 sps:$4 sm:$0xff]   ;;  %v1101_v58 = vld [vmem:[#allocation2 + $0x60] ss:$8 sps:$4 sm:$0xff]  }
  0x3a   :  { %v1102_v59 = vld [vmem:[#allocation2 + $0xe0] ss:$8 sps:$4 sm:$0xff]   ;;  %v1103_v60 = vld [vmem:[#allocation2 + $0x74] ss:$8 sps:$4 sm:$0xff]   ;;  %v1107_v62 = vld [vmem:[#allocation2 + $0x70] ss:$8 sps:$4 sm:$0xff]  }
  0x3b   :  { %v1105_v61 = vld [vmem:[#allocation2 + $0xf4] ss:$8 sps:$4 sm:$0xff]   ;;  %v1108_v63 = vld [vmem:[#allocation2 + $0xf0] ss:$8 sps:$4 sm:$0xff]   ;;  %v50_v1 = vshrl.u32 %v49_v0, 7 }
  0x3c   :  { %582 = vmatpush1.bf16.msra.mxu0 %v1030_v11  ;;  %995 = vmatpush1.bf16.msra.mxu1 %v1030_v11  ;;  %v47_v3 = vld [vmem:[%s1317_s2] sm:$0x3]  ;;  %s1185_s2 = smov [#allocation7]  }
  0x3d   :  { %583 = vmatprep.subr.bf16.mxu0 %v1031_v12  ;;  %980 = vmatprep.subr.bf16.mxu1 %v1031_v12  ;;  %v51_v2 = vsub.s32 0, %v50_v1  ;;  %v55_v4 = vsub.s32 1, %v50_v1  ;;  %s897_s11 = sshll.u32 %s1185_s2, 4  ;;  %s898_s11 = int_to_ptr.vmem [resolvable:$true] %s897_s11 }
  0x3e   :  { %s1153_s12 = scalar_lea.vmem %s898_s11, 8192  ;;  %p1158_p3 = scmp.lt.s32.totalorder %s898_s11, %s898_s11 }
  0x3f   :  { %v1235_v5 = vrot.slane %v47_v3, %v51_v2  ;;  %v1237_v6 = vrot.slane %v47_v3, %v55_v4  ;;  %p1154_p2 = scmp.ne.s32.totalorder %s898_s11, %s1153_s12  ;;  %p1159_p4 = scmp.lt.s32.totalorder %s1153_s12, %s1153_s12 }
  0x40   :  { %584 = vmatpush1.bf16.msra.mxu0 %v1033_v14  ;;  %996 = vmatpush1.bf16.msra.mxu1 %v1033_v14 }
  0x41   :  { %585 = vmatprep.subr.bf16.mxu0 %v1034_v16  ;;  %981 = vmatprep.subr.bf16.mxu1 %v1034_v16  ;;  %p1160_p5 = por %p1159_p4, %p1158_p3 }
  0x43   :  { %p1161_p6 = pnand %p1160_p5, %p1154_p2 }
  0x44   :  { %586 = vmatpush1.bf16.msra.mxu0 %v1036_v17  ;;  %997 = vmatpush1.bf16.msra.mxu1 %v1036_v17 }
  0x45   :  { %587 = vmatprep.subr.bf16.mxu0 %v1037_v18  ;;  %982 = vmatprep.subr.bf16.mxu1 %v1037_v18 }
  0x48   :  { %588 = vmatpush1.bf16.msra.mxu0 %v1039_v19  ;;  %998 = vmatpush1.bf16.msra.mxu1 %v1039_v19 }
  0x49   :  { %589 = vmatprep.subr.bf16.mxu0 %v1040_v20  ;;  %983 = vmatprep.subr.bf16.mxu1 %v1040_v20 }
  0x4c   :  { %590 = vmatpush1.bf16.msra.mxu0 %v1042_v21  ;;  %999 = vmatpush1.bf16.msra.mxu1 %v1042_v21 }
  0x4d   :  { %591 = vmatprep.subr.bf16.mxu0 %v1043_v22  ;;  %984 = vmatprep.subr.bf16.mxu1 %v1043_v22 }
  0x50   :  { %592 = vmatpush1.bf16.msra.mxu0 %v1045_v23  ;;  %1000 = vmatpush1.bf16.msra.mxu1 %v1045_v23 }
  0x51   :  { %593 = vmatprep.subr.bf16.mxu0 %v1046_v24  ;;  %985 = vmatprep.subr.bf16.mxu1 %v1046_v24 }
  0x54   :  { %594 = vmatpush1.bf16.msra.mxu0 %v1048_v25  ;;  %1001 = vmatpush1.bf16.msra.mxu1 %v1048_v25 }
  0x55   :  { %595 = vmatprep.subr.bf16.mxu0 %v1049_v26  ;;  %986 = vmatprep.subr.bf16.mxu1 %v1049_v26 }
  0x58   :  { %596 = vmatpush1.bf16.msra.mxu0 %v1051_v27  ;;  %1002 = vmatpush1.bf16.msra.mxu1 %v1051_v27 }
  0x59   :  { %597 = vmatprep.subr.bf16.mxu0 %v1052_v28  ;;  %987 = vmatprep.subr.bf16.mxu1 %v1052_v28 }
  0x5c   :  { %598 = vmatpush1.bf16.msra.mxu0 %v1054_v29  ;;  %1003 = vmatpush1.bf16.msra.mxu1 %v1054_v29 }
  0x5d   :  { %599 = vmatprep.subr.bf16.mxu0 %v1055_v30  ;;  %988 = vmatprep.subr.bf16.mxu1 %v1055_v30 }
  0x60   :  { %600 = vmatpush1.bf16.msra.mxu0 %v1057_v31  ;;  %1004 = vmatpush1.bf16.msra.mxu1 %v1057_v31 }
  0x61   :  { %601 = vmatprep.subr.bf16.mxu0 %v1058_v32  ;;  %989 = vmatprep.subr.bf16.mxu1 %v1058_v32 }
  0x64   :  { %602 = vmatpush1.bf16.msra.mxu0 %v1060_v33  ;;  %1005 = vmatpush1.bf16.msra.mxu1 %v1060_v33 }
  0x67   :  { %604 = vmatmul.mubr.bf16.vlgmr.msra.gmra.mrb[0].mxu0 %v1061_v34  ;;  %684 = vmatmul.mubr.bf16.vlgmr.msra.gmra.mrb[0].mxu1 %v1064_v35 }
  0x68   :  { %613 = vmatprep.mubr.bf16.mxu0 %v1067_v36  ;;  %693 = vmatprep.mubr.bf16.mxu1 %v1069_v37 }
  0x6f   :  { %614 = vmatmul.mubr.bf16.gmra.mrb[4].mxu0 %v1071_v38  ;;  %694 = vmatmul.mubr.bf16.gmra.mrb[4].mxu1 %v1072_v39 }
  0x70   :  { %623 = vmatprep.mubr.bf16.mxu0 %v1073_v40  ;;  %703 = vmatprep.mubr.bf16.mxu1 %v1075_v41 }
  0x77   :  { %624 = vmatmul.mubr.bf16.gmra.mrb[8].mxu0 %v1077_v42  ;;  %704 = vmatmul.mubr.bf16.gmra.mrb[8].mxu1 %v1078_v43 }
  0x78   :  { %633 = vmatprep.mubr.bf16.mxu0 %v1079_v44  ;;  %713 = vmatprep.mubr.bf16.mxu1 %v1081_v45 }
  0x7f   :  { %634 = vmatmul.mubr.bf16.gmra.mrb[12].mxu0 %v1083_v46  ;;  %714 = vmatmul.mubr.bf16.gmra.mrb[12].mxu1 %v1084_v47 }
  0x80   :  { %643 = vmatprep.mubr.bf16.mxu0 %v1085_v48  ;;  %723 = vmatprep.mubr.bf16.mxu1 %v1087_v49 }
  0x87   :  { %644 = vmatmul.mubr.bf16.gmra.mrb[16].mxu0 %v1089_v50  ;;  %724 = vmatmul.mubr.bf16.gmra.mrb[16].mxu1 %v1090_v51 }
  0x88   :  { %653 = vmatprep.mubr.bf16.mxu0 %v1091_v52  ;;  %733 = vmatprep.mubr.bf16.mxu1 %v1093_v53 }
  0x8f   :  { %654 = vmatmul.mubr.bf16.gmra.mrb[20].mxu0 %v1095_v54  ;;  %734 = vmatmul.mubr.bf16.gmra.mrb[20].mxu1 %v1096_v55 }
  0x90   :  { %663 = vmatprep.mubr.bf16.mxu0 %v1097_v56  ;;  %743 = vmatprep.mubr.bf16.mxu1 %v1099_v57 }
  0x97   :  { %664 = vmatmul.mubr.bf16.gmra.mrb[24].mxu0 %v1101_v58  ;;  %744 = vmatmul.mubr.bf16.gmra.mrb[24].mxu1 %v1102_v59 }
  0x98   :  { %673 = vmatprep.mubr.bf16.mxu0 %v1103_v60  ;;  %753 = vmatprep.mubr.bf16.mxu1 %v1105_v61 }
  0x9f   :  { %674 = vmatmul.mubr.bf16.gmra.mrb[28].mxu0 %v1107_v62  ;;  %754 = vmatmul.mubr.bf16.gmra.mrb[28].mxu1 %v1108_v63 }
 0x13a   :  { %v605_v7 = vpop.f32.mrb[0].mxu0  ;;  %v685_v8 = vpop.f32.mrb[0].mxu1 }
 0x13b   :  { %v764_v9 = vadd.f32 %v605_v7, %v1235_v5  ;;  %v796_v10 = vadd.f32 %v685_v8, %v1235_v5  ;;  %v607_v11 = vpop.f32.mrb[1].mxu0  ;;  %v687_v12 = vpop.f32.mrb[1].mxu1 }
 0x13c   :  { %v765_v13 = vadd.f32 %v607_v11, %v1237_v6  ;;  %v797_v14 = vadd.f32 %v687_v12, %v1237_v6  ;;  %v609_v15 = vpop.f32.mrb[2].mxu0  ;;  %v689_v16 = vpop.f32.mrb[2].mxu1 }
 0x13d   :  { %828 = vst [vmem:[#allocation7] sm:$0xff] %v764_v9  ;;  %860 = vst [vmem:[#allocation7 + $0x100] sm:$0xff] %v796_v10  ;;  %v766_v17 = vadd.f32 %v609_v15, %v1235_v5  ;;  %v798_v18 = vadd.f32 %v689_v16, %v1235_v5  ;;  %v611_v19 = vpop.f32.mrb[3].mxu0  ;;  %v691_v20 = vpop.f32.mrb[3].mxu1 }
 0x13e   :  { %829 = vst [vmem:[#allocation7 + $0x8] sm:$0xff] %v765_v13  ;;  %861 = vst [vmem:[#allocation7 + $0x108] sm:$0xff] %v797_v14  ;;  %v767_v21 = vadd.f32 %v611_v19, %v1237_v6  ;;  %v799_v22 = vadd.f32 %v691_v20, %v1237_v6 }
 0x13f   :  { %830 = vst [vmem:[#allocation7 + $0x10] sm:$0xff] %v766_v17  ;;  %862 = vst [vmem:[#allocation7 + $0x110] sm:$0xff] %v798_v18 }
 0x140   :  { %831 = vst [vmem:[#allocation7 + $0x18] sm:$0xff] %v767_v21  ;;  %863 = vst [vmem:[#allocation7 + $0x118] sm:$0xff] %v799_v22 }
 0x142   :  { %v615_v23 = vpop.f32.mrb[4].mxu0  ;;  %v695_v24 = vpop.f32.mrb[4].mxu1 }
 0x143   :  { %v768_v25 = vadd.f32 %v615_v23, %v1235_v5  ;;  %v800_v26 = vadd.f32 %v695_v24, %v1235_v5  ;;  %v617_v27 = vpop.f32.mrb[5].mxu0  ;;  %v697_v28 = vpop.f32.mrb[5].mxu1 }
 0x144   :  { %v769_v29 = vadd.f32 %v617_v27, %v1237_v6  ;;  %v801_v30 = vadd.f32 %v697_v28, %v1237_v6  ;;  %v619_v31 = vpop.f32.mrb[6].mxu0  ;;  %v699_v32 = vpop.f32.mrb[6].mxu1 }
 0x145   :  { %832 = vst [vmem:[#allocation7 + $0x20] sm:$0xff] %v768_v25  ;;  %864 = vst [vmem:[#allocation7 + $0x120] sm:$0xff] %v800_v26  ;;  %v770_v33 = vadd.f32 %v619_v31, %v1235_v5  ;;  %v802_v34 = vadd.f32 %v699_v32, %v1235_v5  ;;  %v621_v35 = vpop.f32.mrb[7].mxu0  ;;  %v701_v36 = vpop.f32.mrb[7].mxu1 }
 0x146   :  { %833 = vst [vmem:[#allocation7 + $0x28] sm:$0xff] %v769_v29  ;;  %865 = vst [vmem:[#allocation7 + $0x128] sm:$0xff] %v801_v30  ;;  %v771_v37 = vadd.f32 %v621_v35, %v1237_v6  ;;  %v803_v38 = vadd.f32 %v701_v36, %v1237_v6 }
 0x147   :  { %834 = vst [vmem:[#allocation7 + $0x30] sm:$0xff] %v770_v33  ;;  %866 = vst [vmem:[#allocation7 + $0x130] sm:$0xff] %v802_v34 }
 0x148   :  { %835 = vst [vmem:[#allocation7 + $0x38] sm:$0xff] %v771_v37  ;;  %867 = vst [vmem:[#allocation7 + $0x138] sm:$0xff] %v803_v38 }
 0x14a   :  { %v625_v39 = vpop.f32.mrb[8].mxu0  ;;  %v705_v40 = vpop.f32.mrb[8].mxu1 }
 0x14b   :  { %v772_v41 = vadd.f32 %v625_v39, %v1235_v5  ;;  %v804_v42 = vadd.f32 %v705_v40, %v1235_v5  ;;  %v627_v43 = vpop.f32.mrb[9].mxu0  ;;  %v707_v44 = vpop.f32.mrb[9].mxu1 }
 0x14c   :  { %v773_v45 = vadd.f32 %v627_v43, %v1237_v6  ;;  %v805_v46 = vadd.f32 %v707_v44, %v1237_v6  ;;  %v629_v47 = vpop.f32.mrb[10].mxu0  ;;  %v709_v48 = vpop.f32.mrb[10].mxu1 }
 0x14d   :  { %836 = vst [vmem:[#allocation7 + $0x40] sm:$0xff] %v772_v41  ;;  %868 = vst [vmem:[#allocation7 + $0x140] sm:$0xff] %v804_v42  ;;  %v774_v49 = vadd.f32 %v629_v47, %v1235_v5  ;;  %v806_v50 = vadd.f32 %v709_v48, %v1235_v5  ;;  %v631_v51 = vpop.f32.mrb[11].mxu0  ;;  %v711_v52 = vpop.f32.mrb[11].mxu1 }
 0x14e   :  { %837 = vst [vmem:[#allocation7 + $0x48] sm:$0xff] %v773_v45  ;;  %869 = vst [vmem:[#allocation7 + $0x148] sm:$0xff] %v805_v46  ;;  %v775_v53 = vadd.f32 %v631_v51, %v1237_v6  ;;  %v807_v54 = vadd.f32 %v711_v52, %v1237_v6 }
 0x14f   :  { %838 = vst [vmem:[#allocation7 + $0x50] sm:$0xff] %v774_v49  ;;  %870 = vst [vmem:[#allocation7 + $0x150] sm:$0xff] %v806_v50 }
 0x150   :  { %839 = vst [vmem:[#allocation7 + $0x58] sm:$0xff] %v775_v53  ;;  %871 = vst [vmem:[#allocation7 + $0x158] sm:$0xff] %v807_v54 }
 0x152   :  { %v635_v55 = vpop.f32.mrb[12].mxu0  ;;  %v715_v56 = vpop.f32.mrb[12].mxu1 }
 0x153   :  { %v776_v57 = vadd.f32 %v635_v55, %v1235_v5  ;;  %v808_v58 = vadd.f32 %v715_v56, %v1235_v5  ;;  %v637_v59 = vpop.f32.mrb[13].mxu0  ;;  %v717_v60 = vpop.f32.mrb[13].mxu1 }
 0x154   :  { %v777_v61 = vadd.f32 %v637_v59, %v1237_v6  ;;  %v809_v62 = vadd.f32 %v717_v60, %v1237_v6  ;;  %v639_v63 = vpop.f32.mrb[14].mxu0  ;;  %v719_v0 = vpop.f32.mrb[14].mxu1 }
 0x155   :  { %840 = vst [vmem:[#allocation7 + $0x60] sm:$0xff] %v776_v57  ;;  %872 = vst [vmem:[#allocation7 + $0x160] sm:$0xff] %v808_v58  ;;  %v778_v1 = vadd.f32 %v639_v63, %v1235_v5  ;;  %v810_v2 = vadd.f32 %v719_v0, %v1235_v5  ;;  %v641_v3 = vpop.f32.mrb[15].mxu0  ;;  %v721_v4 = vpop.f32.mrb[15].mxu1 }
 0x156   :  { %841 = vst [vmem:[#allocation7 + $0x68] sm:$0xff] %v777_v61  ;;  %873 = vst [vmem:[#allocation7 + $0x168] sm:$0xff] %v809_v62  ;;  %v779_v7 = vadd.f32 %v641_v3, %v1237_v6  ;;  %v811_v8 = vadd.f32 %v721_v4, %v1237_v6 }
 0x157   :  { %842 = vst [vmem:[#allocation7 + $0x70] sm:$0xff] %v778_v1  ;;  %874 = vst [vmem:[#allocation7 + $0x170] sm:$0xff] %v810_v2 }
 0x158   :  { %843 = vst [vmem:[#allocation7 + $0x78] sm:$0xff] %v779_v7  ;;  %875 = vst [vmem:[#allocation7 + $0x178] sm:$0xff] %v811_v8 }
 0x15a   :  { %v645_v9 = vpop.f32.mrb[16].mxu0  ;;  %v725_v10 = vpop.f32.mrb[16].mxu1 }
 0x15b   :  { %v780_v11 = vadd.f32 %v645_v9, %v1235_v5  ;;  %v812_v12 = vadd.f32 %v725_v10, %v1235_v5  ;;  %v647_v13 = vpop.f32.mrb[17].mxu0  ;;  %v727_v14 = vpop.f32.mrb[17].mxu1 }
 0x15c   :  { %v781_v15 = vadd.f32 %v647_v13, %v1237_v6  ;;  %v813_v16 = vadd.f32 %v727_v14, %v1237_v6  ;;  %v649_v17 = vpop.f32.mrb[18].mxu0  ;;  %v729_v18 = vpop.f32.mrb[18].mxu1 }
 0x15d   :  { %844 = vst [vmem:[#allocation7 + $0x80] sm:$0xff] %v780_v11  ;;  %876 = vst [vmem:[#allocation7 + $0x180] sm:$0xff] %v812_v12  ;;  %v782_v19 = vadd.f32 %v649_v17, %v1235_v5  ;;  %v814_v20 = vadd.f32 %v729_v18, %v1235_v5  ;;  %v651_v21 = vpop.f32.mrb[19].mxu0  ;;  %v731_v22 = vpop.f32.mrb[19].mxu1 }
 0x15e   :  { %845 = vst [vmem:[#allocation7 + $0x88] sm:$0xff] %v781_v15  ;;  %877 = vst [vmem:[#allocation7 + $0x188] sm:$0xff] %v813_v16  ;;  %v783_v23 = vadd.f32 %v651_v21, %v1237_v6  ;;  %v815_v24 = vadd.f32 %v731_v22, %v1237_v6 }
 0x15f   :  { %846 = vst [vmem:[#allocation7 + $0x90] sm:$0xff] %v782_v19  ;;  %878 = vst [vmem:[#allocation7 + $0x190] sm:$0xff] %v814_v20 }
 0x160   :  { %847 = vst [vmem:[#allocation7 + $0x98] sm:$0xff] %v783_v23  ;;  %879 = vst [vmem:[#allocation7 + $0x198] sm:$0xff] %v815_v24 }
 0x162   :  { %v655_v25 = vpop.f32.mrb[20].mxu0  ;;  %v735_v26 = vpop.f32.mrb[20].mxu1 }
 0x163   :  { %v784_v27 = vadd.f32 %v655_v25, %v1235_v5  ;;  %v816_v28 = vadd.f32 %v735_v26, %v1235_v5  ;;  %v657_v29 = vpop.f32.mrb[21].mxu0  ;;  %v737_v30 = vpop.f32.mrb[21].mxu1 }
 0x164   :  { %v785_v31 = vadd.f32 %v657_v29, %v1237_v6  ;;  %v817_v32 = vadd.f32 %v737_v30, %v1237_v6  ;;  %v659_v33 = vpop.f32.mrb[22].mxu0  ;;  %v739_v34 = vpop.f32.mrb[22].mxu1 }
 0x165   :  { %848 = vst [vmem:[#allocation7 + $0xa0] sm:$0xff] %v784_v27  ;;  %880 = vst [vmem:[#allocation7 + $0x1a0] sm:$0xff] %v816_v28  ;;  %v786_v35 = vadd.f32 %v659_v33, %v1235_v5  ;;  %v818_v36 = vadd.f32 %v739_v34, %v1235_v5  ;;  %v661_v37 = vpop.f32.mrb[23].mxu0  ;;  %v741_v38 = vpop.f32.mrb[23].mxu1 }
 0x166   :  { %849 = vst [vmem:[#allocation7 + $0xa8] sm:$0xff] %v785_v31  ;;  %881 = vst [vmem:[#allocation7 + $0x1a8] sm:$0xff] %v817_v32  ;;  %v787_v39 = vadd.f32 %v661_v37, %v1237_v6  ;;  %v819_v40 = vadd.f32 %v741_v38, %v1237_v6 }
 0x167   :  { %850 = vst [vmem:[#allocation7 + $0xb0] sm:$0xff] %v786_v35  ;;  %882 = vst [vmem:[#allocation7 + $0x1b0] sm:$0xff] %v818_v36 }
 0x168   :  { %851 = vst [vmem:[#allocation7 + $0xb8] sm:$0xff] %v787_v39  ;;  %883 = vst [vmem:[#allocation7 + $0x1b8] sm:$0xff] %v819_v40 }
 0x16a   :  { %v665_v41 = vpop.f32.mrb[24].mxu0  ;;  %v745_v42 = vpop.f32.mrb[24].mxu1 }
 0x16b   :  { %v788_v43 = vadd.f32 %v665_v41, %v1235_v5  ;;  %v820_v44 = vadd.f32 %v745_v42, %v1235_v5  ;;  %v667_v45 = vpop.f32.mrb[25].mxu0  ;;  %v747_v46 = vpop.f32.mrb[25].mxu1 }
 0x16c   :  { %v789_v47 = vadd.f32 %v667_v45, %v1237_v6  ;;  %v821_v48 = vadd.f32 %v747_v46, %v1237_v6  ;;  %v669_v49 = vpop.f32.mrb[26].mxu0  ;;  %v749_v50 = vpop.f32.mrb[26].mxu1 }
 0x16d   :  { %852 = vst [vmem:[#allocation7 + $0xc0] sm:$0xff] %v788_v43  ;;  %884 = vst [vmem:[#allocation7 + $0x1c0] sm:$0xff] %v820_v44  ;;  %v790_v51 = vadd.f32 %v669_v49, %v1235_v5  ;;  %v822_v52 = vadd.f32 %v749_v50, %v1235_v5  ;;  %v671_v53 = vpop.f32.mrb[27].mxu0  ;;  %v751_v54 = vpop.f32.mrb[27].mxu1 }
 0x16e   :  { %853 = vst [vmem:[#allocation7 + $0xc8] sm:$0xff] %v789_v47  ;;  %885 = vst [vmem:[#allocation7 + $0x1c8] sm:$0xff] %v821_v48  ;;  %v791_v55 = vadd.f32 %v671_v53, %v1237_v6  ;;  %v823_v56 = vadd.f32 %v751_v54, %v1237_v6 }
 0x16f   :  { %854 = vst [vmem:[#allocation7 + $0xd0] sm:$0xff] %v790_v51  ;;  %886 = vst [vmem:[#allocation7 + $0x1d0] sm:$0xff] %v822_v52 }
 0x170   :  { %855 = vst [vmem:[#allocation7 + $0xd8] sm:$0xff] %v791_v55  ;;  %887 = vst [vmem:[#allocation7 + $0x1d8] sm:$0xff] %v823_v56 }
 0x172   :  { %v675_v57 = vpop.f32.mrb[28].mxu0  ;;  %v755_v58 = vpop.f32.mrb[28].mxu1 }
 0x173   :  { %v792_v59 = vadd.f32 %v675_v57, %v1235_v5  ;;  %v824_v60 = vadd.f32 %v755_v58, %v1235_v5  ;;  %v677_v61 = vpop.f32.mrb[29].mxu0  ;;  %v757_v62 = vpop.f32.mrb[29].mxu1 }
 0x174   :  { %v793_v63 = vadd.f32 %v677_v61, %v1237_v6  ;;  %v825_v0 = vadd.f32 %v757_v62, %v1237_v6  ;;  %v679_v1 = vpop.f32.mrb[30].mxu0  ;;  %v759_v2 = vpop.f32.mrb[30].mxu1 }
 0x175   :  { %856 = vst [vmem:[#allocation7 + $0xe0] sm:$0xff] %v792_v59  ;;  %888 = vst [vmem:[#allocation7 + $0x1e0] sm:$0xff] %v824_v60  ;;  %v794_v3 = vadd.f32 %v679_v1, %v1235_v5  ;;  %v826_v4 = vadd.f32 %v759_v2, %v1235_v5  ;;  %v681_v7 = vpop.f32.mrb[31].mxu0  ;;  %v761_v8 = vpop.f32.mrb[31].mxu1 }
 0x176   :  { %857 = vst [vmem:[#allocation7 + $0xe8] sm:$0xff] %v793_v63  ;;  %889 = vst [vmem:[#allocation7 + $0x1e8] sm:$0xff] %v825_v0  ;;  %v795_v9 = vadd.f32 %v681_v7, %v1237_v6  ;;  %v827_v10 = vadd.f32 %v761_v8, %v1237_v6 }
 0x177   :  { %858 = vst [vmem:[#allocation7 + $0xf0] sm:$0xff] %v794_v3  ;;  %890 = vst [vmem:[#allocation7 + $0x1f0] sm:$0xff] %v826_v4 }
 0x178   :  { %859 = vst [vmem:[#allocation7 + $0xf8] sm:$0xff] %v795_v9  ;;  %891 = vst [vmem:[#allocation7 + $0x1f8] sm:$0xff] %v827_v10 }
 0x179   :  { %1164 = shalt.err (!%p1161_p6)
}
 0x17a   :  { %s1165_s15 = scalar_lea.hbm %s1318_s3, 8192 }
 0x17b   :  { %p1166_p7 = scmp.ne.s32.totalorder %s1318_s3, %s1165_s15  ;;  %p1169_p8 = scmp.lt.u32.totalorder %s1165_s15, %s1318_s3 }
 0x17d   :  { %p1171_p9 = pnand %p1169_p8, %p1166_p7 }
 0x17f   :  { %1174 = shalt.err (!%p1171_p9)
}
 0x180   :  { %s1186_s20 = smov 256   ;;  %s1187_s21 = smov 16  }
 0x181   :  { %903 = dma.vmem_to_hbm [thread:$0]  %s898_s11, 8192, %s1318_s3, [#allocation4], %s1186_s20, %s1186_s20, %s1187_s21  }
 0x182   :  { %1179 = dma.done.wait [#allocation4], 8192  }
 0x183   :  { %1180 = vsyncadd [#allocation4], 4294959104 }
 0x184   :  { %907 = vsyncpa [#allocation3], 1 }
 0x185   :  { %908 = vsyncpa [#allocation6], 1 }
 0x186   :  { %909 = vsyncpa [#allocation4], 1 }

</bundles_post_ra>
